<compile_context>
chip_gen: v6e
topology: v6e:2x2x1
jax: 0.10.0
libtpu: 0.0.40
codegen_flags: <defaults>
</compile_context>

<pallas_src>
import jax
import jax.numpy as jnp
from jax import lax
from jax.experimental import pallas as pl
from jax.experimental.pallas import tpu as pltpu

EPS = 1e-5  # nn.BatchNorm2d default eps


def _choose_tr(Ho, Wo, p, W, target_lanes=8192):
    """Window-rows per tile.  Prefer the full Ho (block == full array dims, always a
    legal BlockSpec); otherwise the largest divisor of Ho that keeps both the input
    and output tiles 128-lane aligned and under the lane budget."""
    if Ho * p * W <= target_lanes:
        return Ho
    for tr in range(Ho - 1, 0, -1):
        if Ho % tr:
            continue
        if tr * p * W > target_lanes:
            continue
        if (tr * p * W) % 128 == 0 and (tr * Wo) % 128 == 0:
            return tr
    return Ho


def _vmem_limit(tile_bytes):
    # Generous headroom over the estimated tile working set, clamped so the value is
    # valid on every generation (v7x has only 64 MiB physical VMEM).
    return int(min(64 << 20, max(32 << 20, 4 * tile_bytes + (8 << 20))))


def multi_embed_forward(x_nchw, conv_w, conv_b, bn_gamma, bn_beta, patch_size=4):
    """x_nchw: (N, Cin, H, W).  Returns (N, embed_dim, ceil(H/p), ceil(W/p))."""
    p = patch_size
    N, Cin, H0, W0 = x_nchw.shape
    D = conv_w.shape[0]

    pad_h, pad_w = (-H0) % p, (-W0) % p
    x = x_nchw
    if pad_h or pad_w:
        # F.pad happens before conv/BN in the module, so padded (zero) pixels take part
        # in the batch statistics and in the edge pooling windows.
        x = jnp.pad(x, ((0, 0), (0, 0), (0, pad_h), (0, pad_w)))
    H, W = H0 + pad_h, W0 + pad_w
    Ho, Wo = H // p, W // p

    cdt = x.dtype                                   # streamed dtype (bf16 halves DMA bytes)
    w2 = conv_w.reshape(D, Cin).astype(jnp.float32)
    b = conv_b.astype(jnp.float32)
    gamma = bn_gamma.astype(jnp.float32)
    beta = bn_beta.astype(jnp.float32)

    # Free reshape only (row-major (H, W) collapses to H*W) -- no HBM transpose.
    x3 = x.reshape(N, Cin, H * W)

    TR = _choose_tr(Ho, Wo, p, W)                   # window-rows per tile
    TH = TR * p                                     # image rows per tile
    TPW = TH * W                                    # lanes per input tile (spatial on lanes)
    TRWo = TR * Wo                                  # lanes per output tile
    nH = Ho // TR
    grid = (N, nH)

    x_spec = pl.BlockSpec((1, Cin, TPW), lambda n, h: (n, 0, h))

    # ------------------- pass 1: global BN statistics from sum(x), Gram(x) ----------------
    def stats_kernel(x_ref, sum_ref, gram_ref):
        @pl.when((pl.program_id(0) == 0) & (pl.program_id(1) == 0))
        def _init():
            sum_ref[...] = jnp.zeros_like(sum_ref)
            gram_ref[...] = jnp.zeros_like(gram_ref)

        xt = x_ref[0]                                            # (Cin, TPW)
        sum_ref[...] += jnp.sum(xt.astype(jnp.float32), axis=1, keepdims=True)
        # xt @ xt.T on the MXU (contract the big lane dim of both operands).
        gram_ref[...] += lax.dot_general(
            xt, xt, dimension_numbers=(((1,), (1,)), ((), ())),
            preferred_element_type=jnp.float32)

    sum_x, gram = pl.pallas_call(
        stats_kernel,
        out_shape=(jax.ShapeDtypeStruct((Cin, 1), jnp.float32),
                   jax.ShapeDtypeStruct((Cin, Cin), jnp.float32)),
        grid=grid,
        in_specs=[x_spec],
        out_specs=(pl.BlockSpec((Cin, 1), lambda n, h: (0, 0)),
                   pl.BlockSpec((Cin, Cin), lambda n, h: (0, 0))),
        compiler_params=pltpu.CompilerParams(
            dimension_semantics=("arbitrary", "arbitrary"),       # cross-tile accumulation
            vmem_limit_bytes=_vmem_limit(2 * Cin * TPW * 4)),
    )(x3)

    # Tiny (Cin/D-sized) glue math: analytic batch statistics of y = W x + b and the
    # BN fold.  Centered Gram keeps the variance numerically clean (bias cancels exactly).
    sum_x = sum_x[:, 0]                                           # (Cin,)
    Pcnt = jnp.float32(N * H * W)
    mu_x = sum_x / Pcnt                                           # E[x] per input channel
    mean = w2 @ mu_x + b                                          # E[y] per output channel
    gram_c = gram - Pcnt * jnp.outer(mu_x, mu_x)                  # sum_p (x-mu)(x-mu)^T
    var = jnp.sum((w2 @ gram_c) * w2, axis=1) / Pcnt              # biased batch variance of y
    scale = gamma * lax.rsqrt(var + EPS)
    w_fused = (scale[:, None] * w2).astype(cdt)                   # BN folded into the 1x1 conv
    b_fused = (scale * (b - mean) + beta).reshape(D, 1).astype(jnp.float32)

    # One-hot "gather" matrix: picks the anchor lane (row offset 0, col offset 0) of every
    # p x p pooling window and packs them into a dense (D, TR*Wo) output tile on the MXU.
    anchor = (jnp.arange(TR) * (p * W))[:, None] + (jnp.arange(Wo) * p)[None, :]
    sel = (jnp.arange(TPW)[:, None] == anchor.reshape(-1)[None, :]).astype(jnp.float32)

    # ------------------- pass 2: fused conv+BN apply and max-pool --------------------------
    def apply_kernel(x_ref, w_ref, b_ref, sel_ref, o_ref):
        xt = x_ref[0]                                             # (Cin, TPW), spatial on lanes
        # 1x1 conv with BN folded in: one MXU matmul, lane-dense (D, TPW) result.
        y = jnp.dot(w_ref[...], xt, preferred_element_type=jnp.float32) + b_ref[...]

        def shift_up(v, s):
            # u[:, q] = v[:, q + s]; wrapped values only land on lanes the one-hot gather
            # ignores (and stay finite, so 0 * garbage == 0 in the gather matmul).
            return jnp.concatenate([v[:, s:], v[:, :s]], axis=1)

        # max over the p column offsets, then over the p row offsets (lane shifts in VMEM).
        yc = y
        for j in range(1, p):
            yc = jnp.maximum(yc, shift_up(y, j))
        m = yc
        for i in range(1, p):
            m = jnp.maximum(m, shift_up(yc, i * W))
        # Compact the window-anchor lanes into a dense (D, TR*Wo) tile and store.
        o_ref[0] = jnp.dot(m, sel_ref[...],
                           preferred_element_type=jnp.float32).astype(o_ref.dtype)

    out_flat = pl.pallas_call(
        apply_kernel,
        out_shape=jax.ShapeDtypeStruct((N, D, Ho * Wo), cdt),
        grid=grid,
        in_specs=[
            x_spec,
            pl.BlockSpec((D, Cin), lambda n, h: (0, 0)),
            pl.BlockSpec((D, 1), lambda n, h: (0, 0)),
            pl.BlockSpec((TPW, TRWo), lambda n, h: (0, 0)),
        ],
        out_specs=pl.BlockSpec((1, D, TRWo), lambda n, h: (n, 0, h)),
        compiler_params=pltpu.CompilerParams(
            dimension_semantics=("parallel", "parallel"),          # independent tiles -> megacore
            vmem_limit_bytes=_vmem_limit(
                2 * Cin * TPW * 4 + 2 * D * TRWo * 4
                + (D * Cin + D + TPW * TRWo) * 4 + 6 * D * TPW * 4)),
    )(x3, w_fused, b_fused, sel)

    # Free reshape back to NCHW (no transpose).
    return out_flat.reshape(N, D, Ho, Wo)
    # TODO(synk): eval-mode BN (running-stats buffers) is not modeled; this matches a freshly
    # constructed module in train() mode (batch statistics), and norm_layer=None (no LayerNorm).


def ref_forward(x_nchw, conv_w, conv_b, gamma, beta, patch_size=4):
    """Pure-JAX reference mirroring the PyTorch forward (train-mode BN)."""
    p = patch_size
    N, Cin, H, W = x_nchw.shape
    x = jnp.pad(x_nchw, ((0, 0), (0, 0), (0, (-H) % p), (0, (-W) % p)))
    D = conv_w.shape[0]
    y = jnp.einsum("nchw,dc->ndhw", x, conv_w.reshape(D, Cin)) \
        + conv_b[None, :, None, None]
    mean = jnp.mean(y, axis=(0, 2, 3), keepdims=True)
    var = jnp.mean((y - mean) ** 2, axis=(0, 2, 3), keepdims=True)
    z = (y - mean) * lax.rsqrt(var + EPS) * gamma[None, :, None, None] \
        + beta[None, :, None, None]
    Hp, Wp = z.shape[2], z.shape[3]
    z = z.reshape(N, D, Hp // p, p, Wp // p, p)
    return jnp.max(jnp.max(z, axis=5), axis=3)


if __name__ == "__main__":
    # Small shapes consistent with the module: N=2, in_chans=4, H=W=16, embed_dim=32, patch=4.
    N, Cin, H, W = 2, 4, 16, 16
    D, p = 32, 4

    key = jax.random.PRNGKey(0)
    k1, k2, k3, k4, k5 = jax.random.split(key, 5)
    x = jax.random.normal(k1, (N, Cin, H, W), jnp.float32)
    conv_w = 0.1 * jax.random.normal(k2, (D, Cin, 1, 1), jnp.float32)   # Conv2d 1x1 weight
    conv_b = 0.1 * jax.random.normal(k3, (D,), jnp.float32)             # Conv2d bias
    bn_gamma = 1.0 + 0.1 * jax.random.normal(k4, (D,), jnp.float32)     # BN weight
    bn_beta = 0.1 * jax.random.normal(k5, (D,), jnp.float32)            # BN bias

    out = jax.block_until_ready(
        multi_embed_forward(x, conv_w, conv_b, bn_gamma, bn_beta, patch_size=p))
    ref = ref_forward(x, conv_w, conv_b, bn_gamma, bn_beta, patch_size=p)

    assert out.shape == (N, D, H // p, W // p), out.shape
    err = float(jnp.max(jnp.abs(out - ref)))
    assert jnp.allclose(out, ref, atol=1e-3, rtol=1e-3), err
    print("KERNEL_OK")
</pallas_src>

<mosaic_0001>
module attributes {stable_mosaic.version = 11 : i64} {
  func.func @stats_kernel(%arg0: i32, %arg1: i32, %arg2: memref<1x4x256xf32, #tpu.memory_space<vmem>>, %arg3: memref<4x1xf32, #tpu.memory_space<vmem>>, %arg4: memref<4x4xf32, #tpu.memory_space<vmem>>) attributes {dimension_semantics = [#tpu.dimension_semantics<arbitrary>, #tpu.dimension_semantics<arbitrary>], iteration_bounds = array<i64: 2, 1>, scalar_prefetch = 0 : i64, scratch_operands = 0 : i64, tpu.core_type = #tpu.core_type<tc>, window_params = [{transform_indices = @transform_0, window_bounds = array<i64: 1, 4, 256>}, {pipeline_mode = #tpu.pipeline_mode<synchronous>, transform_indices = @transform_1, window_bounds = array<i64: 4, 1>}, {pipeline_mode = #tpu.pipeline_mode<synchronous>, transform_indices = @transform_2, window_bounds = array<i64: 4, 4>}]} {
    %c0_i32 = arith.constant 0 : i32
    %0 = arith.cmpi eq, %arg0, %c0_i32 : i32
    %c0_i32_0 = arith.constant 0 : i32
    %1 = arith.cmpi eq, %arg1, %c0_i32_0 : i32
    %2 = arith.andi %0, %1 : i1
    %3 = arith.extui %2 : i1 to i32
    %c0_i32_1 = arith.constant 0 : i32
    %4 = arith.cmpi ne, %3, %c0_i32_1 : i32
    scf.if %4 {
      %cst_13 = arith.constant 0.000000e+00 : f32
      %16 = vector.broadcast %cst_13 : f32 to vector<4x1xf32>
      %c0_14 = arith.constant 0 : index
      %c0_15 = arith.constant 0 : index
      %17 = vector.load %arg3[%c0_14, %c0_15] : memref<4x1xf32, #tpu.memory_space<vmem>>, vector<4x1xf32>
      tpu.vector_store %arg3[%c0_14, %c0_15], %16 {strides = array<i32>} : memref<4x1xf32, #tpu.memory_space<vmem>>, vector<4x1xf32>,
      %cst_16 = arith.constant 0.000000e+00 : f32
      %18 = vector.broadcast %cst_16 : f32 to vector<4x4xf32>
      %c0_17 = arith.constant 0 : index
      %c0_18 = arith.constant 0 : index
      %19 = vector.load %arg4[%c0_17, %c0_18] : memref<4x4xf32, #tpu.memory_space<vmem>>, vector<4x4xf32>
      tpu.vector_store %arg4[%c0_17, %c0_18], %18 {strides = array<i32>} : memref<4x4xf32, #tpu.memory_space<vmem>>, vector<4x4xf32>,
    } else {
    }
    %c0 = arith.constant 0 : index
    %c0_2 = arith.constant 0 : index
    %c0_3 = arith.constant 0 : index
    %5 = vector.load %arg2[%c0, %c0_2, %c0_3] : memref<1x4x256xf32, #tpu.memory_space<vmem>>, vector<1x4x256xf32>
    %6 = vector.shape_cast %5 : vector<1x4x256xf32> to vector<4x256xf32>
    %c0_4 = arith.constant 0 : index
    %c0_5 = arith.constant 0 : index
    %7 = vector.load %arg3[%c0_4, %c0_5] : memref<4x1xf32, #tpu.memory_space<vmem>>, vector<4x1xf32>
    %cst = arith.constant dense<0.000000e+00> : vector<4xf32>
    %8 = vector.multi_reduction <add>, %6, %cst [1] : vector<4x256xf32> to vector<4xf32>
    %9 = vector.shape_cast %8 : vector<4xf32> to vector<4x1xf32>
    %10 = arith.addf %7, %9 : vector<4x1xf32>
    %c0_6 = arith.constant 0 : index
    %c0_7 = arith.constant 0 : index
    %11 = vector.load %arg3[%c0_6, %c0_7] : memref<4x1xf32, #tpu.memory_space<vmem>>, vector<4x1xf32>
    tpu.vector_store %arg3[%c0_6, %c0_7], %10 {strides = array<i32>} : memref<4x1xf32, #tpu.memory_space<vmem>>, vector<4x1xf32>,
    %c0_8 = arith.constant 0 : index
    %c0_9 = arith.constant 0 : index
    %12 = vector.load %arg4[%c0_8, %c0_9] : memref<4x4xf32, #tpu.memory_space<vmem>>, vector<4x4xf32>
    %cst_10 = arith.constant dense<0.000000e+00> : vector<4x4xf32>
    %13 = tpu.matmul %6, %6, %cst_10 {dimension_numbers = #tpu.dot_dimension_numbers<[1], [1], [0], [0], [0, 0, 1, 0], [], []>} : vector<4x256xf32>, vector<4x256xf32>, vector<4x4xf32> -> vector<4x4xf32>
    %14 = arith.addf %12, %13 : vector<4x4xf32>
    %c0_11 = arith.constant 0 : index
    %c0_12 = arith.constant 0 : index
    %15 = vector.load %arg4[%c0_11, %c0_12] : memref<4x4xf32, #tpu.memory_space<vmem>>, vector<4x4xf32>
    tpu.vector_store %arg4[%c0_11, %c0_12], %14 {strides = array<i32>} : memref<4x4xf32, #tpu.memory_space<vmem>>, vector<4x4xf32>,
    return
  }
  func.func @transform_0(%arg0: i32, %arg1: i32) -> (i32, i32, i32) {
    %c0_i32 = arith.constant 0 : i32
    %c0_i32_0 = arith.constant 0 : i32
    return %arg0, %c0_i32, %arg1 : i32, i32, i32
  }
  func.func @transform_1(%arg0: i32, %arg1: i32) -> (i32, i32) {
    %c0_i32 = arith.constant 0 : i32
    %c0_i32_0 = arith.constant 0 : i32
    %c0_i32_1 = arith.constant 0 : i32
    return %c0_i32, %c0_i32_0 : i32, i32
  }
  func.func @transform_2(%arg0: i32, %arg1: i32) -> (i32, i32) {
    %c0_i32 = arith.constant 0 : i32
    %c0_i32_0 = arith.constant 0 : i32
    %c0_i32_1 = arith.constant 0 : i32
    return %c0_i32, %c0_i32_0 : i32, i32
  }
}

</mosaic_0001>

<bundles_post_ra>
// kernel: tpu_custom_call.1
= control target key start
LH: loop header
LB: loop body
LE: loop exit
PB: predicated region body
PF: predicated region fallthrough
CT: control target
= control target key end

     0   :  { %8 = vsyncpa [#allocation3], 0  ;;  %s665_s0 = inlined_call_operand.hbm [shape: f32[2,4,256], index: 0, kind: input, shape index: {}]   ;;  %s666_s1 = inlined_call_operand.vmem [shape: f32[4,1], index: 1, kind: output, shape index: {0}]   ;;  %s667_s2 = inlined_call_operand.hbm [shape: f32[4,4], index: 2, kind: output, shape index: {1}]  }
   0x1   :  { %10 = vsyncpa [#allocation3 + $0x1], 0 }
   0x2   :  { %11 = vsyncpa [#allocation4], 0  ;;  %s541_s9 = smov 0   ;;  %s543_s10 = smov 0  }
   0x3   :  { %s545_s11 = smov 0   ;;  %s547_s12 = smov 0  }
   0x4   :  { %s549_s13 = smov 0   ;;  %s551_s14 = smov 0  }
   0x5 LB: > { %s336_s15 = sadd.s32 4294967295, %s521_s14   ;;  %s29_s16 = sadd.s32 1, %s517_s13  ;;  %s521_s14 = sphi %s551_s14, %s17_s14   ;;  %s517_s13 = sphi %s549_s13, %s676_s13   ;;  %s513_s12 = sphi %s547_s12, %s675_s12   ;;  %s509_s11 = sphi %s545_s11, %s674_s11   ;;  %s505_s10 = sphi %s543_s10, %s673_s10   ;;  %s501_s9 = sphi %s541_s9, %s672_s9  }
   0x6   : > { %p31_p0 = scmp.ge.s32.totalorder %s29_s16, 2  ;;  %s38_s17 = sadd.s32 1, %s509_s11 }
   0x7   : > { %p45_p1 = scmp.ne.s32.totalorder %s509_s11, %s505_s10  ;;  %p46_p2 = scmp.eq.s32.totalorder %s521_s14, 0 }
   0x8   : > { %s678_s16 = smov (%p31_p0, %s29_s16), 0  ;;  %p51_p4 = scmp.ne.s32.totalorder %s505_s10, %s501_s9 }
   0x9   : > { %p577_p3 = por %p46_p2, %p45_p1  ;;  %s33_s19 = ssub.s32 %s517_s13, %s678_s16 }
   0xa   : > { %p52_p5 = scmp.eq.s32.totalorder %s336_s15, 0  ;;  %p36_p6 = scmp.eq.s32.totalorder %s33_s19, 0 }
   0xb   : > { %p361_p8 = scmp.lt.s32.totalorder %s521_s14, 2  ;;  %s117_s22 = sand.u32 1, %s509_s11  }
   0xc   : > { %p586_p7 = por %p52_p5, %p51_p4  ;;  %s349_s23 = sshll.u32 %s517_s13, 7 }
   0xd   : > { %s592_s21 = scalar_select %p36_p6, %s509_s11, %s38_s17  }
   0xe   : > { %s339_s24 = sshll.u32 %s117_s22, 3  ;;  %s129_s27 = scalar_lea.hbm %s665_s0, %s349_s23 }
   0xf   : > { %s121_s28 = scalar_lea.vmem [#allocation2], %s339_s24  ;;  %p601_p9 = pnand %p361_p8, %p577_p3 }
  0x10   : > { %s131_s29 = sshll.u32 %s121_s28, 4  ;;  %p342_p10 = scmp.ge.s32.totalorder %s521_s14, 1  ;;  %s132_s29 = int_to_ptr.vmem [resolvable:$true] %s131_s29 }
  0x11   : > { %p136_p11 = scmp.lt.s32.totalorder %s521_s14, 3  ;;  %s118_s3 = scalar_lea.sflag [#allocation3], %s117_s22 }
  0x12   : > { %p417_p12 = pneg %p601_p9  ;;  %s428_s4 = scalar_lea.vmem %s132_s29, 128 }
  0x13   : > { %p429_p13 = scmp.ne.s32.totalorder %s132_s29, %s428_s4  ;;  %s523_s5 = smov [#allocation2]  }
  0x14   : > { %s433_s6 = sshll.u32 %s523_s5, 4  ;;  %s434_s6 = int_to_ptr.vmem [resolvable:$false] %s433_s6 }
  0x15   : > { %p431_p0 = pnand %p429_p13, %p417_p12  ;;  %s435_s7 = scalar_lea.vmem %s434_s6, 256 }
  0x16   : > { %p436_p2 = scmp.lt.s32.totalorder %s132_s29, %s434_s6  ;;  %p437_p3 = scmp.lt.s32.totalorder %s435_s7, %s428_s4 }
  0x17   : > { %p432_p1 = pneg %p431_p0 }
  0x18   : > { %p438_p4 = por %p437_p3, %p436_p2 }
  0x1a   : > { %p439_p5 = pnand %p438_p4, %p432_p1 }
  0x1c   : > { %442 = shalt.err (!%p439_p5)
}
  0x1d   : > { %360 = dma.hbm_to_vmem [thread:$0]  (!%p601_p9), %s129_s27, 128, %s132_s29, %s118_s3  }
  0x1e   : > { %p137_p6 = pnand %p342_p10, %p136_p11 }
  0x1f   : > { %s142_s8 = sand.u32 (!%p137_p6), 1, %s505_s10  }
  0x20   : > { %140 = sbr.rel (%p137_p6) target bundleno = 252 (0xfc), region = 24  ;;  %s343_s9 = sshll.u32 (!%p137_p6), %s142_s8, 3 }
  0x21   : > { %s143_s17 = scalar_lea.sflag (!%p137_p6), [#allocation3], %s142_s8  ;;  %s146_s18 = scalar_lea.vmem (!%p137_p6), [#allocation2], %s343_s9 }
  0x25   : > { %492 = dma.done.wait (%p586_p7), %s143_s17, 128  }
  0x26   : > { %494 = vsyncadd (%p586_p7), %s143_s17, 4294967168  ;;  %p163_p8 = scmp.eq.s32.totalorder %s513_s12, 0 }
  0x27   : > { %vm169_vm0 = vcmask (%p163_p8), 3072   ;;  %vm171_vm1 = vcmask (%p163_p8), 27648   ;;  %v524_v0 = vmov (%p163_p8), 0.0  }
  0x28   : > { %168 = sbr.rel (!%p163_p8) target bundleno = 45 (0x2d), region = 32  ;;  %170 = vst.msk [vmem:[%s666_s1] sm:$0xf] (%p163_p8), %vm169_vm0, %v524_v0 }
  0x29   : > { %172 = vst.msk [vmem:[#allocation5] sm:$0xf] (%p163_p8), %vm171_vm1, %v524_v0 }
  0x2d PF: > { %v173_v1 = vld [vmem:[%s146_s18] sm:$0xff]  ;;  %vm178_vm2 = vcmask 1043456   ;;  %vm185_vm3 = vcmask 3072   ;;  %s525_s25 = smov [#allocation5]   ;;  %vm259_vm4 = vcmask 27648   ;;  %p632_p7 = scmp.eq.s32.totalorder %s336_s15, 1 }
  0x2e   : > { %v176_v2 = vcombine.high %v173_v1, %v173_v1  ;;  %v179_v3 = vsel %vm178_vm2, %v173_v1, 0.0  ;;  %s271_s26 = sshll.u32 %s525_s25, 4  ;;  %s272_s26 = int_to_ptr.vmem [resolvable:$true] %s271_s26 }
  0x2f   : > { %v174_v6 = vld [vmem:[%s666_s1] sm:$0xf]  ;;  %s443_s28 = scalar_lea.vmem %s272_s26, 64  ;;  %p450_p12 = scmp.lt.s32.totalorder %s272_s26, %s272_s26 }
  0x30   : > { %218 = vmatprep.subr.mxu0 %v176_v2  ;;  %252 = vmatprep.mubr.f32.mxu0 %v176_v2  ;;  %v180_v4 = vsel %vm178_vm2, %v176_v2, 0.0  ;;  %v187_v9 = vld [vmem:[#allocation5] sm:$0xf]  ;;  %p444_p9 = scmp.ne.s32.totalorder %s272_s26, %s443_s28  ;;  %p451_p13 = scmp.lt.s32.totalorder %s443_s28, %s443_s28 }
  0x31   : > { %219 = vmatpush1.xpose.msra.mxu0 %v173_v1  ;;  %v181_v5 = vadd.f32 %v180_v4, %v179_v3 }
  0x32   : > { %p445_p10 = pnand %p444_p9, %p632_p7  ;;  %p452_p0 = por %p451_p13, %p450_p12 }
  0x33   : > { %182 = vadd.xlane.f32.xlu0 %v181_v5 }
  0x34   : > { %253 = vmatmul.mubr.f32.vlgmr.msra.gmra.mxu0 %v173_v1  ;;  %p446_p11 = pneg %p445_p10 }
  0x36   : > { %p453_p1 = pnand %p452_p0, %p446_p11 }
  0xbc   : > { %v183_v7 = vpop.xlane.xlu0 %182 }
  0xbd   : > { %v184_v8 = vadd.f32 %v183_v7, %v174_v6 }
  0xbf   : > { %186 = vst.msk [vmem:[%s666_s1] sm:$0xf] %vm185_vm3, %v184_v8 }
  0xf4   : > { %v254_v10 = vpop.f32.mrf.mxu0 }
  0xf5   : > { %v258_v11 = vadd.f32 %v254_v10, %v187_v9 }
  0xf6   : > { %v256_v12 = vpop.f32.mrf.mxu0 }
  0xf7   : > { %260 = vst.msk [vmem:[#allocation5] sm:$0xf] %vm259_vm4, %v258_v11 }
  0xf8   : > { %456 = shalt.err (!%p453_p1)
}
  0xf9   : > { %354 = dma.vmem_to_hbm [thread:$0]  (%p632_p7), %s272_s26, 64, %s667_s2, [#allocation4]  }
  0xfa   : > { %496 = dma.done.wait (%p632_p7), [#allocation4], 64  }
  0xfb   : > { %498 = vsyncadd (%p632_p7), [#allocation4], 4294967232 }
  0xfc PF: > { %s17_s14 = sadd.s32 1, %s521_s14   ;;  %s672_s9 = smov %s505_s10 }
  0xfd   : > { %p14_p2 = scmp.ge.s32.totalorder %s17_s14, 4   ;;  %s673_s10 = smov %s509_s11 }
  0xfe   : > { %s674_s11 = smov %s592_s21  ;;  %s675_s12 = smov %s517_s13 }
  0xff   : > { %s676_s13 = smov %s678_s16  ;;  %16 = sbr.rel (!%p14_p2) target bundleno = 5 (0x5), region = 73 }
 0x104   :  { %287 = vsyncpa [#allocation3], 1 }
 0x105   :  { %289 = vsyncpa [#allocation3 + $0x1], 1 }
 0x106   :  { %290 = vsyncpa [#allocation4], 1 }
 0x107   :  { %292 = vsyncpa [#allocation4 + $0x1], 1 }

</bundles_post_ra>
